<compile_context>
chip_gen: v5e
topology: v5e:2x2
jax: 0.10.0
libtpu: 0.0.40
codegen_flags: <defaults>
</compile_context>

<pallas_src>
import jax
import jax.numpy as jnp
from jax import lax
from jax.experimental import pallas as pl
from jax.experimental.pallas import tpu as pltpu


def _make_mlp_kernel(num_layers: int):
    """Stack of Linear layers with ReLU between them (not after the last)."""

    def kernel(x_ref, w_ref, b_ref, o_ref):
        # x_ref: (bm, P)    batch tile on sublanes, padded features on lanes
        # w_ref: (L, P, P)  PyTorch (out, in) weights, zero-padded
        # b_ref: (L, P, 1)  biases, zero-padded
        # o_ref: (out_dim, bm)  lane-dense over the batch tile
        x = x_ref[...]
        # Layer 0: contract W0's "in" dim with x's feature dim directly
        # ("op,bp->ob"), i.e. W0 @ x^T without any explicit transpose.
        h = lax.dot_general(
            w_ref[0], x,
            dimension_numbers=(((1,), (1,)), ((), ())),
            preferred_element_type=jnp.float32,
        ) + b_ref[0]
        if num_layers > 1:
            h = jnp.maximum(h, 0.0)                       # ReLU after hidden layer
        for li in range(1, num_layers):                   # tiny L -> fully unrolled
            h = jnp.dot(w_ref[li], h,
                        preferred_element_type=jnp.float32) + b_ref[li]
            if li < num_layers - 1:
                h = jnp.maximum(h, 0.0)
        o_ref[...] = h[: o_ref.shape[0], :].astype(o_ref.dtype)

    return kernel


def _pick_batch_tile(batch: int) -> int:
    """Bounded, lane-friendly batch tile.

    cap 512 keeps (P, bm) activations register-resident (no vreg spills);
    for batch > 256 we guarantee >= 2 grid steps so the "parallel" grid axis
    can shard across v7x's two TensorCores.
    """
    if batch <= 256:
        return batch                                   # single step, full-dim block
    bm = 128 * max(1, (batch // 2) // 128)             # multiple of 128, >= 2 steps
    return min(bm, 512)


def make_mlp_forward(weights, biases, out_dtype=jnp.float32):
    """Pack parameters ONCE and return a jitted forward(x) -> (batch, out_dim)."""
    num_layers = len(weights)
    in_dim = weights[0].shape[1]
    out_dim = weights[-1].shape[0]

    # Common padded feature width covering every layer's in/out dims.
    dims = [in_dim] + [d for w in weights for d in w.shape]
    P = max(8, -(-max(dims) // 8) * 8)                 # round up to sublane multiple

    # One-time packing of all layers into two zero-padded operands.
    w_all = jnp.zeros((num_layers, P, P), jnp.float32)
    b_all = jnp.zeros((num_layers, P, 1), jnp.float32)
    for i, (w, b) in enumerate(zip(weights, biases)):
        o, k = w.shape
        w_all = w_all.at[i, :o, :k].set(jnp.asarray(w, jnp.float32))
        b_all = b_all.at[i, :o, 0].set(jnp.reshape(jnp.asarray(b, jnp.float32), (-1,)))
    w_all = jax.device_put(w_all)
    b_all = jax.device_put(b_all)

    kernel = _make_mlp_kernel(num_layers)
    layer_flops = 2 * sum(w.shape[0] * w.shape[1] for w in weights)

    @jax.jit
    def forward(x):
        batch = x.shape[0]
        bm = _pick_batch_tile(batch)
        padded_batch = bm * pl.cdiv(batch, bm)

        xp = x.astype(jnp.float32)
        # Pad features to P and (only when tiling) batch to a multiple of bm.
        # Single fused XLA pad inside this jit; a no-op at the test sizes.
        xp = jnp.pad(xp, ((0, padded_batch - batch), (0, P - x.shape[1])))

        grid = (padded_batch // bm,)
        cost = pl.CostEstimate(
            flops=layer_flops * padded_batch,
            transcendentals=0,
            bytes_accessed=4 * (xp.size + w_all.size + b_all.size
                                + out_dim * padded_batch),
        )

        out_t = pl.pallas_call(
            kernel,
            out_shape=jax.ShapeDtypeStruct((out_dim, padded_batch), out_dtype),
            grid_spec=pltpu.PrefetchScalarGridSpec(
                num_scalar_prefetch=0,
                grid=grid,
                in_specs=[
                    pl.BlockSpec((bm, P), lambda i: (i, 0)),                # x tile
                    # Grid-invariant parameter blocks. NOTE: for very large
                    # hidden sizes (P ~ 1-2k) switch these to single-buffered
                    # / per-layer streamed blocks to fit v7x's 64 MiB VMEM.
                    pl.BlockSpec((num_layers, P, P), lambda i: (0, 0, 0)),  # weights
                    pl.BlockSpec((num_layers, P, 1), lambda i: (0, 0, 0)),  # biases
                ],
                out_specs=pl.BlockSpec((out_dim, bm), lambda i: (0, i)),
            ),
            compiler_params=pltpu.CompilerParams(
                dimension_semantics=("parallel",),
            ),
            cost_estimate=cost,
        )(xp, w_all, b_all)

        out = out_t[:, :batch]                         # (out_dim, batch)
        if out_dim == 1:
            return out.reshape(batch, 1)               # order-preserving, no copy
        return out.T

    return forward


def _reference_mlp(x, weights, biases):
    h = x
    n = len(weights)
    for li, (w, b) in enumerate(zip(weights, biases)):
        h = h @ w.T + jnp.reshape(b, (1, -1))
        if li < n - 1:
            h = jnp.maximum(h, 0.0)
    return h


if __name__ == "__main__":
    # Module hyperparameters (MLP.__init__ args), activation = ReLU.
    number_of_hidden_layers = 2
    input_size = 32
    hidden_size = 32
    batch = 8

    dims_in = [input_size] + [hidden_size] * number_of_hidden_layers
    dims_out = [hidden_size] * number_of_hidden_layers + [1]

    key = jax.random.PRNGKey(0)
    keys = jax.random.split(key, 2 * (number_of_hidden_layers + 1) + 1)

    weights, biases = [], []
    for i in range(number_of_hidden_layers + 1):
        limit = jnp.sqrt(6.0 / (dims_in[i] + dims_out[i]))   # xavier_uniform
        weights.append(
            jax.random.uniform(keys[2 * i], (dims_out[i], dims_in[i]),
                               dtype=jnp.float32, minval=-limit, maxval=limit))
        # small non-zero biases so the bias-add path is actually exercised
        biases.append(0.1 * jax.random.normal(keys[2 * i + 1], (dims_out[i],),
                                              dtype=jnp.float32))

    x = jax.random.normal(keys[-1], (batch, input_size), dtype=jnp.float32)

    mlp_forward = make_mlp_forward(weights, biases)      # packs params once
    out = jax.block_until_ready(mlp_forward(x))          # first (compile) call
    out = jax.block_until_ready(mlp_forward(x))          # cached-path reuse
    ref = _reference_mlp(x, weights, biases)

    assert out.shape == (batch, 1), out.shape
    assert jnp.allclose(out, ref, atol=1e-5, rtol=1e-5), (
        f"max abs diff = {float(jnp.max(jnp.abs(out - ref)))}"
    )

    print("KERNEL_OK")
</pallas_src>

<mosaic_0001>
module attributes {stable_mosaic.version = 11 : i64} {
  func.func @kernel(%arg0: i32, %arg1: memref<8x32xf32, #tpu.memory_space<vmem>>, %arg2: memref<3x32x32xf32, #tpu.memory_space<vmem>>, %arg3: memref<3x32x1xf32, #tpu.memory_space<vmem>>, %arg4: memref<1x8xf32, #tpu.memory_space<vmem>>) attributes {dimension_semantics = [#tpu.dimension_semantics<parallel>], iteration_bounds = array<i64: 1>, scalar_prefetch = 0 : i64, scratch_operands = 0 : i64, tpu.core_type = #tpu.core_type<tc>, window_params = [{transform_indices = @transform_0, window_bounds = array<i64: 8, 32>}, {pipeline_mode = #tpu.pipeline_mode<synchronous>, transform_indices = @transform_1, window_bounds = array<i64: 3, 32, 32>}, {pipeline_mode = #tpu.pipeline_mode<synchronous>, transform_indices = @transform_2, window_bounds = array<i64: 3, 32, 1>}, {transform_indices = @transform_3, window_bounds = array<i64: 1, 8>}]} {
    %c0 = arith.constant 0 : index
    %c0_0 = arith.constant 0 : index
    %0 = vector.load %arg1[%c0, %c0_0] : memref<8x32xf32, #tpu.memory_space<vmem>>, vector<8x32xf32>
    %c0_1 = arith.constant 0 : index
    %c0_2 = arith.constant 0 : index
    %c0_3 = arith.constant 0 : index
    %1 = vector.load %arg2[%c0_1, %c0_2, %c0_3] : memref<3x32x32xf32, #tpu.memory_space<vmem>>, vector<1x32x32xf32>
    %2 = vector.shape_cast %1 : vector<1x32x32xf32> to vector<32x32xf32>
    %cst = arith.constant dense<0.000000e+00> : vector<32x8xf32>
    %3 = tpu.matmul %2, %0, %cst {dimension_numbers = #tpu.dot_dimension_numbers<[1], [1], [0], [0], [0, 0, 1, 0], [], []>} : vector<32x32xf32>, vector<8x32xf32>, vector<32x8xf32> -> vector<32x8xf32>
    %c0_4 = arith.constant 0 : index
    %c0_5 = arith.constant 0 : index
    %c0_6 = arith.constant 0 : index
    %4 = vector.load %arg3[%c0_4, %c0_5, %c0_6] : memref<3x32x1xf32, #tpu.memory_space<vmem>>, vector<1x32x1xf32>
    %5 = vector.shape_cast %4 : vector<1x32x1xf32> to vector<32x1xf32>
    %6 = vector.broadcast %5 : vector<32x1xf32> to vector<32x8xf32>
    %7 = arith.addf %3, %6 : vector<32x8xf32>
    %cst_7 = arith.constant 0.000000e+00 : f32
    %8 = vector.broadcast %cst_7 : f32 to vector<32x8xf32>
    %9 = arith.maximumf %7, %8 : vector<32x8xf32>
    %c1 = arith.constant 1 : index
    %c0_8 = arith.constant 0 : index
    %c0_9 = arith.constant 0 : index
    %10 = vector.load %arg2[%c1, %c0_8, %c0_9] : memref<3x32x32xf32, #tpu.memory_space<vmem>>, vector<1x32x32xf32>
    %11 = vector.shape_cast %10 : vector<1x32x32xf32> to vector<32x32xf32>
    %cst_10 = arith.constant dense<0.000000e+00> : vector<32x8xf32>
    %12 = tpu.matmul %11, %9, %cst_10 {dimension_numbers = #tpu.dot_dimension_numbers<[1], [0], [0], [1], [0, 0, 1, 1], [], []>} : vector<32x32xf32>, vector<32x8xf32>, vector<32x8xf32> -> vector<32x8xf32>
    %c1_11 = arith.constant 1 : index
    %c0_12 = arith.constant 0 : index
    %c0_13 = arith.constant 0 : index
    %13 = vector.load %arg3[%c1_11, %c0_12, %c0_13] : memref<3x32x1xf32, #tpu.memory_space<vmem>>, vector<1x32x1xf32>
    %14 = vector.shape_cast %13 : vector<1x32x1xf32> to vector<32x1xf32>
    %15 = vector.broadcast %14 : vector<32x1xf32> to vector<32x8xf32>
    %16 = arith.addf %12, %15 : vector<32x8xf32>
    %cst_14 = arith.constant 0.000000e+00 : f32
    %17 = vector.broadcast %cst_14 : f32 to vector<32x8xf32>
    %18 = arith.maximumf %16, %17 : vector<32x8xf32>
    %c2 = arith.constant 2 : index
    %c0_15 = arith.constant 0 : index
    %c0_16 = arith.constant 0 : index
    %19 = vector.load %arg2[%c2, %c0_15, %c0_16] : memref<3x32x32xf32, #tpu.memory_space<vmem>>, vector<1x32x32xf32>
    %20 = vector.shape_cast %19 : vector<1x32x32xf32> to vector<32x32xf32>
    %cst_17 = arith.constant dense<0.000000e+00> : vector<32x8xf32>
    %21 = tpu.matmul %20, %18, %cst_17 {dimension_numbers = #tpu.dot_dimension_numbers<[1], [0], [0], [1], [0, 0, 1, 1], [], []>} : vector<32x32xf32>, vector<32x8xf32>, vector<32x8xf32> -> vector<32x8xf32>
    %c2_18 = arith.constant 2 : index
    %c0_19 = arith.constant 0 : index
    %c0_20 = arith.constant 0 : index
    %22 = vector.load %arg3[%c2_18, %c0_19, %c0_20] : memref<3x32x1xf32, #tpu.memory_space<vmem>>, vector<1x32x1xf32>
    %23 = vector.shape_cast %22 : vector<1x32x1xf32> to vector<32x1xf32>
    %24 = vector.broadcast %23 : vector<32x1xf32> to vector<32x8xf32>
    %25 = arith.addf %21, %24 : vector<32x8xf32>
    %26 = vector.extract_strided_slice %25 {offsets = [0, 0], sizes = [1, 8], strides = [1, 1]} : vector<32x8xf32> to vector<1x8xf32>
    %c0_21 = arith.constant 0 : index
    %c0_22 = arith.constant 0 : index
    %27 = vector.load %arg4[%c0_21, %c0_22] : memref<1x8xf32, #tpu.memory_space<vmem>>, vector<1x8xf32>
    tpu.vector_store %arg4[%c0_21, %c0_22], %26 {strides = array<i32>} : memref<1x8xf32, #tpu.memory_space<vmem>>, vector<1x8xf32>,
    return
  }
  func.func @transform_0(%arg0: i32) -> (i32, i32) {
    %c0_i32 = arith.constant 0 : i32
    %c0_i32_0 = arith.constant 0 : i32
    return %arg0, %c0_i32 : i32, i32
  }
  func.func @transform_1(%arg0: i32) -> (i32, i32, i32) {
    %c0_i32 = arith.constant 0 : i32
    %c0_i32_0 = arith.constant 0 : i32
    %c0_i32_1 = arith.constant 0 : i32
    %c0_i32_2 = arith.constant 0 : i32
    return %c0_i32, %c0_i32_0, %c0_i32_1 : i32, i32, i32
  }
  func.func @transform_2(%arg0: i32) -> (i32, i32, i32) {
    %c0_i32 = arith.constant 0 : i32
    %c0_i32_0 = arith.constant 0 : i32
    %c0_i32_1 = arith.constant 0 : i32
    %c0_i32_2 = arith.constant 0 : i32
    return %c0_i32, %c0_i32_0, %c0_i32_1 : i32, i32, i32
  }
  func.func @transform_3(%arg0: i32) -> (i32, i32) {
    %c0_i32 = arith.constant 0 : i32
    %c0_i32_0 = arith.constant 0 : i32
    return %c0_i32, %arg0 : i32, i32
  }
}

</mosaic_0001>

<bundles_post_ra>
// kernel: forward.1
= control target key start
LH: loop header
LB: loop body
LE: loop exit
PB: predicated region body
PF: predicated region fallthrough
CT: control target
= control target key end

     0   :  { %8 = vsyncpa [#allocation3], 0  ;;  %s483_s0 = inlined_call_operand.hbm [shape: f32[8,32], index: 0, kind: input, shape index: {}]   ;;  %s484_s1 = inlined_call_operand.hbm [shape: f32[3,32,32], index: 1, kind: input, shape index: {}]   ;;  %s485_s2 = inlined_call_operand.hbm [shape: f32[3,32,1], index: 2, kind: input, shape index: {}]   ;;  %s486_s3 = inlined_call_operand.hbm [shape: f32[1,8], index: 3, kind: output, shape index: {}]  }
   0x1   :  { %9 = vsyncpa [#allocation6], 0  ;;  %s26_s14 = sshll.u32 %s484_s1, 4  ;;  %s27_s14 = int_to_ptr.hbm [resolvable:$true] %s26_s14 }
   0x2   :  { %10 = vsyncpa [#allocation4], 0  ;;  %s431_s15 = smov [#allocation5]   ;;  %s16_s19 = sshll.u32 %s483_s0, 4  ;;  %s17_s19 = int_to_ptr.hbm [resolvable:$true] %s16_s19 }
   0x3   :  { %s28_s16 = sshll.u32 %s431_s15, 4  ;;  %s432_s20 = smov 128   ;;  %s29_s16 = int_to_ptr.vmem [resolvable:$true] %s28_s16 }
   0x4   :  { %s433_s21 = smov 8   ;;  %s434_s22 = smov [#allocation2]  }
   0x5   :  { %34 = dma.hbm_to_vmem [thread:$0]  %s27_s14, 1536, %s29_s16, [#allocation6], %s432_s20, %s432_s20, %s433_s21  }
   0x6   :  { %s18_s23 = sshll.u32 %s434_s22, 4  ;;  %s39_s26 = sshll.u32 %s485_s2, 4  ;;  %s19_s23 = int_to_ptr.vmem [resolvable:$true] %s18_s23  ;;  %s40_s26 = int_to_ptr.hbm [resolvable:$true] %s39_s26 }
   0x7   :  { %21 = dma.hbm_to_vmem [thread:$0]  %s17_s19, 128, %s19_s23, [#allocation3]  }
   0x8   :  { %s435_s1 = smov [#allocation7]  }
   0x9   :  { %s41_s27 = sshll.u32 %s435_s1, 4  ;;  %s42_s27 = int_to_ptr.vmem [resolvable:$true] %s41_s27 }
   0xa   :  { %47 = dma.hbm_to_vmem [thread:$0]  %s40_s26, 1536, %s42_s27, [#allocation6], %s432_s20, %s432_s20, %s433_s21  }
   0xb   :  { %425 = dma.done.wait [#allocation3], 128  }
   0xc   :  { %426 = vsyncadd [#allocation3], 4294967168 }
   0xd   :  { %427 = dma.done.wait [#allocation6], 3072  }
   0xe   :  { %428 = vsyncadd [#allocation6], 4294964224  ;;  %v436_v0 = vmov 0   ;;  %vm89_vm0 = vcmask 261120   ;;  %v60_v1 = vld [vmem:[#allocation2] sm:$0xff]  ;;  %v66_v2 = vld [vmem:[#allocation7 + $0x8] sm:$0xff] }
   0xf   :  { %327 = vset.pattern.permute.xlu1 %v436_v0  ;;  %326 = vset.pattern.permute.xlu0 %v436_v0  ;;  %v61_v3 = vld [vmem:[#allocation5] sm:$0xff]  ;;  %v68_v4 = vld [vmem:[#allocation7 + $0x18] sm:$0xff]  ;;  %v67_v6 = vld [vmem:[#allocation7 + $0x10] sm:$0xff]  ;;  %s437_s0 = smov [#allocation8]   ;;  %s287_s30 = sshll.u32 %s486_s3, 4  ;;  %vm278_vm1 = vcmask 57344   ;;  %s288_s30 = int_to_ptr.hbm [resolvable:$true] %s287_s30 }
  0x10   :  { %328 = vset.pattern.permute.xlu2 %v436_v0  ;;  %298 = vmatpush.xpose.msk.msra.mxu0 %vm89_vm0, %v60_v1  ;;  %v65_v5 = vld [vmem:[#allocation7] sm:$0xff]  ;;  %v62_v7 = vld [vmem:[#allocation5 + $0x8] sm:$0xff]  ;;  %v63_v10 = vld [vmem:[#allocation5 + $0x10] sm:$0xff]  ;;  %s285_s2 = sshll.u32 %s437_s0, 4  ;;  %s286_s2 = int_to_ptr.vmem [resolvable:$true] %s285_s2 }
  0x11   :  { %76 = vperm.xlu1 %327, %v66_v2   ;;  %86 = vperm.xlu0 %326, %v68_v4   ;;  %v144_v8 = vld [vmem:[#allocation7 + $0x20] sm:$0xff]  ;;  %v145_v9 = vld [vmem:[#allocation7 + $0x28] sm:$0xff]  ;;  %v64_v11 = vld [vmem:[#allocation5 + $0x18] sm:$0xff] }
  0x12   :  { %v147_v17 = vld [vmem:[#allocation7 + $0x38] sm:$0xff]  ;;  %v146_v25 = vld [vmem:[#allocation7 + $0x30] sm:$0xff]  ;;  %v139_v30 = vld [vmem:[#allocation5 + $0x20] sm:$0xff] }
  0x13   :  { %299 = vmatmul.msk.f32.vlgmr.msra.gmra.mxu0 %vm89_vm0, %v61_v3  ;;  %165 = vperm.xlu2 %328, %v147_v17   ;;  %v140_v31 = vld [vmem:[#allocation5 + $0x28] sm:$0xff]  ;;  %v219_v32 = vld [vmem:[#allocation7 + $0x40] sm:$0xff]  ;;  %v141_v33 = vld [vmem:[#allocation5 + $0x30] sm:$0xff] }
  0x14   :  { %v142_v34 = vld [vmem:[#allocation5 + $0x38] sm:$0xff]  ;;  %v214_v51 = vld [vmem:[#allocation5 + $0x40] sm:$0xff]  ;;  %v215_v52 = vld [vmem:[#allocation5 + $0x48] sm:$0xff] }
  0x15   :  { %v216_v53 = vld [vmem:[#allocation5 + $0x50] sm:$0xff]  ;;  %v217_v54 = vld [vmem:[#allocation5 + $0x58] sm:$0xff] }
  0x19   :  { %71 = vperm.xlu1 %327, %v65_v5   ;;  %81 = vperm.xlu0 %326, %v67_v6  }
  0x1b   :  { %300 = vmatmul.msk.f32.gmra.mxu0 %vm89_vm0, %v62_v7  ;;  %160 = vperm.xlu2 %328, %v146_v25  }
  0x21   :  { %150 = vperm.xlu1 %327, %v144_v8   ;;  %155 = vperm.xlu0 %326, %v145_v9  }
  0x23   :  { %301 = vmatmul.msk.f32.gmra.mxu0 %vm89_vm0, %v63_v10  ;;  %225 = vperm.xlu2 %328, %v219_v32  }
  0x2b   :  { %302 = vmatmul.msk.f32.gmra.mxu0 %vm89_vm0, %v64_v11 }
  0x6d   :  { %v166_v36 = vpop.permute.xlu2 %165 }
  0x75   :  { %v161_v38 = vpop.permute.xlu2 %160 }
  0x7d   :  { %v226_v55 = vpop.permute.xlu2 %225 }
  0x83   :  { %v87_v14 = vpop.permute.xlu0 %86  ;;  %v77_v15 = vpop.permute.xlu1 %76 }
  0x8b   :  { %v82_v18 = vpop.permute.xlu0 %81  ;;  %v72_v22 = vpop.permute.xlu1 %71 }
  0x90   :  { %v122_v12 = vpop.f32.mrf.mxu0 }
  0x91   :  { %v123_v26 = vadd.f32 %v122_v12, %v72_v22 }
  0x93   :  { %v134_v29 = vmax.f32 %v123_v26, 0.0  ;;  %v156_v42 = vpop.permute.xlu0 %155  ;;  %v151_v46 = vpop.permute.xlu1 %150 }
  0x98   :  { %v125_v13 = vpop.f32.mrf.mxu0 }
  0x99   :  { %v126_v23 = vadd.f32 %v125_v13, %v77_v15 }
  0x9b   :  { %v135_v28 = vmax.f32 %v126_v23, 0.0 }
  0xa0   :  { %v128_v16 = vpop.f32.mrf.mxu0 }
  0xa1   :  { %v129_v20 = vadd.f32 %v128_v16, %v82_v18 }
  0xa3   :  { %v136_v27 = vmax.f32 %v129_v20, 0.0 }
  0xa8   :  { %v131_v19 = vpop.f32.mrf.mxu0 }
  0xa9   :  { %v132_v21 = vadd.f32 %v131_v19, %v87_v14 }
  0xab   :  { %v137_v24 = vmax.f32 %v132_v21, 0.0 }
  0xad   :  { %192 = vmatpush.msra.mxu1 %v137_v24  ;;  %311 = vmatpush.msra.mxu3 %v137_v24 }
  0xaf   :  { %193 = vmatpush.msra.mxu1 %v136_v27  ;;  %312 = vmatpush.msra.mxu3 %v136_v27 }
  0xb1   :  { %194 = vmatpush.msra.mxu1 %v135_v28  ;;  %313 = vmatpush.msra.mxu3 %v135_v28 }
  0xb3   :  { %195 = vmatpush.msra.mxu1 %v134_v29  ;;  %314 = vmatpush.msra.mxu3 %v134_v29 }
  0xb4   :  { %303 = vmatmul.msk.f32.vlgmr.msra.gmra.mxu1 %vm89_vm0, %v139_v30  ;;  %304 = vmatmul.msk.f32.vlgmr.msra.gmra.mxu3 %vm89_vm0, %v140_v31 }
  0xbc   :  { %305 = vmatmul.msk.f32.gmra.mxu3 %vm89_vm0, %v141_v33 }
  0xc4   :  { %306 = vmatmul.msk.f32.gmra.mxu3 %vm89_vm0, %v142_v34 }
 0x131   :  { %v197_v43 = vpop.f32.mrf.mxu1 }
 0x132   :  { %v198_v47 = vadd.f32 %v197_v43, %v151_v46 }
 0x134   :  { %v209_v50 = vmax.f32 %v198_v47, 0.0 }
 0x137   :  { %v200_v35 = vpop.f32.mrf.mxu3 }
 0x138   :  { %v201_v44 = vadd.f32 %v200_v35, %v156_v42 }
 0x13a   :  { %v210_v49 = vmax.f32 %v201_v44, 0.0 }
 0x13f   :  { %v203_v37 = vpop.f32.mrf.mxu3 }
 0x140   :  { %v204_v40 = vadd.f32 %v203_v37, %v161_v38 }
 0x142   :  { %v211_v48 = vmax.f32 %v204_v40, 0.0 }
 0x147   :  { %v206_v39 = vpop.f32.mrf.mxu3 }
 0x148   :  { %v207_v41 = vadd.f32 %v206_v39, %v166_v36 }
 0x14a   :  { %v212_v45 = vmax.f32 %v207_v41, 0.0 }
 0x14c   :  { %264 = vmatpush.msrb.mxu1 %v212_v45  ;;  %315 = vmatpush.msra.mxu2 %v212_v45 }
 0x14e   :  { %265 = vmatpush.msrb.mxu1 %v211_v48  ;;  %316 = vmatpush.msra.mxu2 %v211_v48 }
 0x150   :  { %266 = vmatpush.msrb.mxu1 %v210_v49  ;;  %317 = vmatpush.msra.mxu2 %v210_v49 }
 0x152   :  { %267 = vmatpush.msrb.mxu1 %v209_v50  ;;  %318 = vmatpush.msra.mxu2 %v209_v50 }
 0x153   :  { %307 = vmatmul.msk.f32.vlgmr.msrb.gmra.mxu1 %vm89_vm0, %v214_v51  ;;  %308 = vmatmul.msk.f32.vlgmr.msra.gmra.mxu2 %vm89_vm0, %v215_v52 }
 0x15b   :  { %309 = vmatmul.msk.f32.gmra.mxu2 %vm89_vm0, %v216_v53 }
 0x163   :  { %310 = vmatmul.msk.f32.gmra.mxu2 %vm89_vm0, %v217_v54 }
 0x1d0   :  { %v269_v56 = vpop.f32.mrf.mxu1 }
 0x1d1   :  { %v270_v57 = vadd.f32 %v269_v56, %v226_v55 }
 0x1d3   :  { %279 = vst.msk [vmem:[#allocation8] sm:$0x1] %vm278_vm1, %v270_v57 }
 0x1d4   :  { %290 = dma.vmem_to_hbm [thread:$0]  %s286_s2, 16, %s288_s30, [#allocation4]  }
 0x1d6   :  { %v272_v58 = vpop.f32.mrf.mxu2 }
 0x1de   :  { %v274_v59 = vpop.f32.mrf.mxu2 }
 0x1e6   :  { %v276_v60 = vpop.f32.mrf.mxu2 }
 0x1e7   :  { %429 = dma.done.wait [#allocation4], 16  }
 0x1e8   :  { %430 = vsyncadd [#allocation4], 4294967280 }
 0x1e9   :  { %295 = vsyncpa [#allocation3], 1 }
 0x1ea   :  { %296 = vsyncpa [#allocation6], 1 }
 0x1eb   :  { %297 = vsyncpa [#allocation4], 1 }

</bundles_post_ra>
